<compile_context>
chip_gen: v6e
topology: v6e:2x2x1
jax: 0.10.0
libtpu: 0.0.40
codegen_flags: <defaults>
</compile_context>

<pallas_src>
import functools

import jax
import jax.numpy as jnp
import numpy as np
from jax.experimental import pallas as pl
from jax.experimental.pallas import tpu as pltpu


_INV_SQRT2 = 1.0 / np.sqrt(2.0)


def _gelu_exact(x):
    # nn.GELU() default is the exact (erf) formulation.
    return 0.5 * x * (1.0 + jax.lax.erf(x * _INV_SQRT2))


def _pool_sum_kernel(x_ref, o_ref, acc_ref, *, hw, hw_tile, n_chunks, mask_tail):
    # x_ref:   (row_tile, hw_tile)  one spatial tile of a row-packed block
    # o_ref:   (row_tile, 1)        per-row spatial sums
    # acc_ref: (row_tile, 128)      narrow f32 lane-parallel partial sums
    s = pl.program_id(1)

    @pl.when(s == 0)
    def _init():
        acc_ref[...] = jnp.zeros_like(acc_ref)

    rows = acc_ref.shape[0]

    if mask_tail:
        # Valid lanes remaining in this tile.  For all non-last spatial steps
        # rem >= hw_tile, so the compare below is an all-true (no-op) mask.
        rem = hw - s * hw_tile
        lane = jax.lax.broadcasted_iota(jnp.int32, (rows, 128), 1)

    def body(k, partial):
        start = pl.multiple_of(k * 128, 128)
        chunk = x_ref[:, pl.ds(start, 128)].astype(jnp.float32)
        if mask_tail:
            chunk = jnp.where(lane < rem - k * 128, chunk, 0.0)
        return partial + chunk

    partial = jax.lax.fori_loop(
        0, n_chunks, body, jnp.zeros((rows, 128), jnp.float32), unroll=True)
    acc_ref[...] += partial                       # one accumulator RMW per step

    @pl.when(s == pl.num_programs(1) - 1)
    def _finalize():
        # Single cross-lane (XLU) reduce of the 128-wide partial sums.
        o_ref[...] = jnp.sum(acc_ref[...], axis=-1, keepdims=True)


def _pick_tiles(n_rows, hw, itemsize, *, target_bytes=2 << 20, row_cap=256,
                hw_cap=4096):
    """Choose (row_tile, hw_tile).

    row_tile: multiple of 8 (or the full row dim when n_rows < 8); kept small
    enough that the row axis has >= 2 blocks when possible, so the megacore
    'parallel' axis has work even at batch=1.
    hw_tile: multiple of 128, sized so one x block is ~target_bytes.
    """
    if n_rows <= 8:
        row_tile = n_rows                            # full dim — always legal
    else:
        row_tile = min((n_rows // 8) * 8, row_cap)
        if n_rows >= 16:
            row_tile = min(row_tile, max(8, (n_rows // 16) * 8))

    hw_full = pl.cdiv(hw, 128) * 128
    lanes = max(128, target_bytes // max(1, row_tile * itemsize))
    hw_tile = max(128, min((lanes // 128) * 128, hw_full, hw_cap))
    return row_tile, hw_tile


def _vmem_limit_bytes(need):
    cap = 32 << 20                 # safe on v5e/v6e (128 MiB) and v7x (64 MiB)
    try:
        cap = min(cap, int(pltpu.get_tpu_info().vmem_capacity_bytes) // 2)
    except Exception:
        pass
    return int(min(max(2 * need, 8 << 20), cap))


def feature_pool(x, w_down, b_down, w_up, b_up, *, hw_tile=None, row_tile=None):
    """x: (B, C, H, W) NCHW. Returns (B, C). Matches Feature_Pool.forward."""
    b, c, h, w = x.shape
    hw = h * w
    n_rows = b * c
    itemsize = int(jnp.dtype(x.dtype).itemsize)

    # (B, C, H, W) -> (B*C, H*W): a free view of the contiguous NCHW layout.
    x_rows = x.reshape(n_rows, hw)

    rt, st = _pick_tiles(n_rows, hw, itemsize)
    if row_tile is not None:
        rt = row_tile
    if hw_tile is not None:
        st = hw_tile
    assert st % 128 == 0, "hw_tile must be a multiple of 128 lanes"
    assert rt == n_rows or rt % 8 == 0, "row_tile must be 8-aligned or the full row dim"

    n_row_blocks = pl.cdiv(n_rows, rt)
    n_sp_blocks = pl.cdiv(hw, st)
    n_chunks = st // 128
    mask_tail = (hw % st) != 0        # only generate masking code when needed

    kernel = functools.partial(_pool_sum_kernel, hw=hw, hw_tile=st,
                               n_chunks=n_chunks, mask_tail=mask_tail)

    # Advisory hint: one streaming read of x plus a tiny write.
    cost = pl.CostEstimate(
        flops=int(n_rows * hw),
        transcendentals=0,
        bytes_accessed=int(n_rows * hw * itemsize + n_rows * 4),
    )

    # Double-buffered x block + narrow f32 accumulator + tiny output block.
    need = 2 * rt * st * itemsize + rt * 128 * 4 + 2 * rt * 4
    vmem_limit = _vmem_limit_bytes(need)

    pooled_sum = pl.pallas_call(
        kernel,
        out_shape=jax.ShapeDtypeStruct((n_rows, 1), jnp.float32),
        grid_spec=pltpu.PrefetchScalarGridSpec(
            num_scalar_prefetch=0,
            grid=(n_row_blocks, n_sp_blocks),                 # reduction axis last
            in_specs=[pl.BlockSpec((rt, st), lambda ri, si: (ri, si))],
            out_specs=pl.BlockSpec((rt, 1), lambda ri, si: (ri, 0)),
            scratch_shapes=[pltpu.VMEM((rt, 128), jnp.float32)],
        ),
        compiler_params=pltpu.CompilerParams(
            dimension_semantics=("parallel", "arbitrary"),
            vmem_limit_bytes=vmem_limit,
        ),
        cost_estimate=cost,
    )(x_rows)

    # Global average pool (f32), exact H*W divisor.
    pooled = pooled_sum.reshape(b, c) * jnp.float32(1.0 / hw)

    # MLP hoisted to plain XLA: proper (B,C)x(C,HID) MXU shapes, zero VMEM
    # footprint inside the streaming kernel.  PyTorch Linear stores (out, in).
    wd = jnp.asarray(w_down).astype(jnp.float32)              # (HID, C)
    wu = jnp.asarray(w_up).astype(jnp.float32)                # (C, HID)
    bd = jnp.asarray(b_down).astype(jnp.float32)
    bu = jnp.asarray(b_up).astype(jnp.float32)

    hid_act = _gelu_exact(pooled @ wd.T + bd)                 # (B, HID)
    y = hid_act @ wu.T + bu                                   # (B, C)
    return y.astype(x.dtype)


def feature_pool_reference(x, w_down, b_down, w_up, b_up):
    pooled = jnp.mean(x.astype(jnp.float32), axis=(2, 3))     # (B, C)
    h = pooled @ w_down.T.astype(jnp.float32) + b_down
    h = _gelu_exact(h)
    return h @ w_up.T.astype(jnp.float32) + b_up              # (B, C)


if __name__ == "__main__":
    # Small shapes consistent with the module: dim = C = 4, ratio = 2.
    B, C, H, W = 2, 4, 16, 16
    RATIO = 2
    HID = C * RATIO

    key = jax.random.PRNGKey(0)
    kx, kwd, kbd, kwu, kbu = jax.random.split(key, 5)

    x = jax.random.normal(kx, (B, C, H, W), dtype=jnp.float32)

    # Deterministic parameter init (PyTorch Linear-style uniform bounds).
    bound_d = 1.0 / np.sqrt(C)
    bound_u = 1.0 / np.sqrt(HID)
    w_down = jax.random.uniform(kwd, (HID, C), minval=-bound_d, maxval=bound_d, dtype=jnp.float32)
    b_down = jax.random.uniform(kbd, (HID,), minval=-bound_d, maxval=bound_d, dtype=jnp.float32)
    w_up = jax.random.uniform(kwu, (C, HID), minval=-bound_u, maxval=bound_u, dtype=jnp.float32)
    b_up = jax.random.uniform(kbu, (C,), minval=-bound_u, maxval=bound_u, dtype=jnp.float32)

    # 1) Default path: one row block (B*C = 8 rows), one spatial tile.
    y = feature_pool(x, w_down, b_down, w_up, b_up)
    y = jax.block_until_ready(y)
    y_ref = feature_pool_reference(x, w_down, b_down, w_up, b_up)
    np.testing.assert_allclose(np.asarray(y), np.asarray(y_ref), rtol=1e-5, atol=1e-5)
    assert y.shape == (B, C)

    # 2) Multi-step spatial accumulation + in-kernel ragged-tail masking
    #    (H*W = 400 is not a multiple of the forced 128-lane tile -> no pad).
    H2, W2 = 20, 20
    x2 = jax.random.normal(jax.random.PRNGKey(1), (B, C, H2, W2), dtype=jnp.float32)
    y2 = feature_pool(x2, w_down, b_down, w_up, b_up, hw_tile=128)
    y2 = jax.block_until_ready(y2)
    y2_ref = feature_pool_reference(x2, w_down, b_down, w_up, b_up)
    np.testing.assert_allclose(np.asarray(y2), np.asarray(y2_ref), rtol=1e-5, atol=1e-5)

    # 3) Row dim smaller than a sublane tile (B=1 -> B*C=4 rows) plus a ragged
    #    tail (H*W = 576 over forced 256-lane tiles): full-row-dim block path.
    x3 = jax.random.normal(jax.random.PRNGKey(2), (1, C, 24, 24), dtype=jnp.float32)
    y3 = feature_pool(x3, w_down, b_down, w_up, b_up, hw_tile=256)
    y3 = jax.block_until_ready(y3)
    y3_ref = feature_pool_reference(x3, w_down, b_down, w_up, b_up)
    np.testing.assert_allclose(np.asarray(y3), np.asarray(y3_ref), rtol=1e-5, atol=1e-5)

    print("KERNEL_OK")
</pallas_src>

<mosaic_0001>
module attributes {stable_mosaic.version = 11 : i64} {
  func.func @_pool_sum_kernel(%arg0: i32, %arg1: i32, %arg2: memref<8x256xf32, #tpu.memory_space<vmem>>, %arg3: memref<8x1xf32, #tpu.memory_space<vmem>>, %arg4: memref<8x128xf32, #tpu.memory_space<vmem>>) attributes {dimension_semantics = [#tpu.dimension_semantics<parallel>, #tpu.dimension_semantics<arbitrary>], iteration_bounds = array<i64: 1, 1>, scalar_prefetch = 0 : i64, scratch_operands = 1 : i64, tpu.core_type = #tpu.core_type<tc>, window_params = [{transform_indices = @transform_0, window_bounds = array<i64: 8, 256>}, {transform_indices = @transform_1, window_bounds = array<i64: 8, 1>}]} {
    %c0_i32 = arith.constant 0 : i32
    %0 = arith.cmpi eq, %arg1, %c0_i32 : i32
    %1 = arith.extui %0 : i1 to i32
    %c0_i32_0 = arith.constant 0 : i32
    %2 = arith.cmpi ne, %1, %c0_i32_0 : i32
    scf.if %2 {
      %cst_10 = arith.constant 0.000000e+00 : f32
      %20 = vector.broadcast %cst_10 : f32 to vector<8x128xf32>
      %c0_11 = arith.constant 0 : index
      %c0_12 = arith.constant 0 : index
      %21 = vector.load %arg4[%c0_11, %c0_12] : memref<8x128xf32, #tpu.memory_space<vmem>>, vector<8x128xf32>
      tpu.vector_store %arg4[%c0_11, %c0_12], %20 {strides = array<i32>} : memref<8x128xf32, #tpu.memory_space<vmem>>, vector<8x128xf32>,
    } else {
    }
    %cst = arith.constant 0.000000e+00 : f32
    %3 = vector.broadcast %cst : f32 to vector<8x128xf32>
    %c0_i32_1 = arith.constant 0 : i32
    %c128_i32 = arith.constant 128 : i32
    %4 = arith.muli %c0_i32_1, %c128_i32 : i32
    %5 = tpu.assume_multiple %4, 128 : i32
    %c0 = arith.constant 0 : index
    %6 = arith.index_cast %5 : i32 to index
    %7 = vector.load %arg2[%c0, %6] : memref<8x256xf32, #tpu.memory_space<vmem>>, vector<8x128xf32>
    %8 = arith.addf %3, %7 : vector<8x128xf32>
    %c1_i32 = arith.constant 1 : i32
    %c128_i32_2 = arith.constant 128 : i32
    %9 = arith.muli %c1_i32, %c128_i32_2 : i32
    %10 = tpu.assume_multiple %9, 128 : i32
    %c0_3 = arith.constant 0 : index
    %11 = arith.index_cast %10 : i32 to index
    %12 = vector.load %arg2[%c0_3, %11] : memref<8x256xf32, #tpu.memory_space<vmem>>, vector<8x128xf32>
    %13 = arith.addf %8, %12 : vector<8x128xf32>
    %c2_i32 = arith.constant 2 : i32
    %c0_4 = arith.constant 0 : index
    %c0_5 = arith.constant 0 : index
    %14 = vector.load %arg4[%c0_4, %c0_5] : memref<8x128xf32, #tpu.memory_space<vmem>>, vector<8x128xf32>
    %15 = arith.addf %14, %13 : vector<8x128xf32>
    %c0_6 = arith.constant 0 : index
    %c0_7 = arith.constant 0 : index
    %16 = vector.load %arg4[%c0_6, %c0_7] : memref<8x128xf32, #tpu.memory_space<vmem>>, vector<8x128xf32>
    tpu.vector_store %arg4[%c0_6, %c0_7], %15 {strides = array<i32>} : memref<8x128xf32, #tpu.memory_space<vmem>>, vector<8x128xf32>,
    %c0_i32_8 = arith.constant 0 : i32
    %17 = arith.cmpi eq, %arg1, %c0_i32_8 : i32
    %18 = arith.extui %17 : i1 to i32
    %c0_i32_9 = arith.constant 0 : i32
    %19 = arith.cmpi ne, %18, %c0_i32_9 : i32
    scf.if %19 {
      %c0_10 = arith.constant 0 : index
      %c0_11 = arith.constant 0 : index
      %20 = vector.load %arg4[%c0_10, %c0_11] : memref<8x128xf32, #tpu.memory_space<vmem>>, vector<8x128xf32>
      %cst_12 = arith.constant dense<0.000000e+00> : vector<8xf32>
      %21 = vector.multi_reduction <add>, %20, %cst_12 [1] : vector<8x128xf32> to vector<8xf32>
      %22 = vector.shape_cast %21 : vector<8xf32> to vector<8x1xf32>
      %c0_13 = arith.constant 0 : index
      %c0_14 = arith.constant 0 : index
      %23 = vector.load %arg3[%c0_13, %c0_14] : memref<8x1xf32, #tpu.memory_space<vmem>>, vector<8x1xf32>
      tpu.vector_store %arg3[%c0_13, %c0_14], %22 {strides = array<i32>} : memref<8x1xf32, #tpu.memory_space<vmem>>, vector<8x1xf32>,
    } else {
    }
    return
  }
  func.func @transform_0(%arg0: i32, %arg1: i32) -> (i32, i32) {
    %c0_i32 = arith.constant 0 : i32
    return %arg0, %arg1 : i32, i32
  }
  func.func @transform_1(%arg0: i32, %arg1: i32) -> (i32, i32) {
    %c0_i32 = arith.constant 0 : i32
    %c0_i32_0 = arith.constant 0 : i32
    return %arg0, %c0_i32 : i32, i32
  }
}

</mosaic_0001>

<bundles_post_ra>
// kernel: tpu_custom_call.1
= control target key start
LH: loop header
LB: loop body
LE: loop exit
PB: predicated region body
PF: predicated region fallthrough
CT: control target
= control target key end

     0   :  { %6 = vsyncpa [#allocation4], 0  ;;  %s69_s6 = smov [#allocation3]   ;;  %s86_s0 = inlined_call_operand.hbm [shape: f32[8,256], index: 0, kind: input, shape index: {}]   ;;  %s87_s1 = inlined_call_operand.vmem [shape: f32[8,1], index: 1, kind: output, shape index: {}]  }
   0x1   :  { %s13_s7 = sshll.u32 %s69_s6, 4  ;;  %s14_s7 = int_to_ptr.vmem [resolvable:$true] %s13_s7 }
   0x2   :  { %s55_s8 = scalar_lea.vmem %s14_s7, 256  ;;  %p60_p1 = scmp.lt.s32.totalorder %s14_s7, %s14_s7 }
   0x3   :  { %p56_p0 = scmp.ne.s32.totalorder %s14_s7, %s55_s8  ;;  %p61_p2 = scmp.lt.s32.totalorder %s55_s8, %s55_s8 }
   0x5   :  { %p62_p3 = por %p61_p2, %p60_p1 }
   0x7   :  { %p63_p4 = pnand %p62_p3, %p56_p0 }
   0x9   :  { %66 = shalt.err (!%p63_p4)
}
   0xa   :  { %16 = dma.hbm_to_vmem [thread:$0]  %s86_s0, 256, %s14_s7, [#allocation4]  }
   0xb   :  { %67 = dma.done.wait [#allocation4], 256  }
   0xc   :  { %68 = vsyncadd [#allocation4], 4294967040  ;;  %v25_v0 = vld [vmem:[#allocation3] sm:$0xff]  ;;  %v28_v1 = vld [vmem:[#allocation3 + $0x8] sm:$0xff]  ;;  %vm39_vm0 = vcmask 7168  }
   0xd   :  { %v29_v2 = vadd.f32 %v28_v1, %v25_v0 }
   0xf   :  { %37 = vadd.xlane.f32.xlu0 %v29_v2 }
  0x98   :  { %v38_v3 = vpop.xlane.xlu0 %37 }
  0x99   :  { %40 = vst.msk [vmem:[%s87_s1] sm:$0xff] %vm39_vm0, %v38_v3 }
  0x9a   :  { %45 = vsyncpa [#allocation4], 1 }

</bundles_post_ra>
